<compile_context>
chip_gen: v6e
topology: v6e:2x2x1
jax: 0.10.0
libtpu: 0.0.40
codegen_flags: <defaults>
</compile_context>

<pallas_src>
import functools
import math
from typing import NamedTuple

import jax
import jax.numpy as jnp
from jax.experimental import pallas as pl
from jax.experimental.pallas import tpu as pltpu


def _round_up(x, m):
    return -(-x // m) * m


def _cdiv(a, b):
    return -(-a // b)


_SQRT_HALF = 0.7071067811865476


def _gelu(h, approximate):
    if approximate:
        # tanh form routes through the EUP slot (co-issues with MXU/VALU work).
        return jax.nn.gelu(h, approximate=True)
    # Exact (erf) GELU -- matches nn.GELU's default.
    return 0.5 * h * (1.0 + jax.lax.erf(h * _SQRT_HALF))


# ---------------------------------------------------------------------------
# Kernels
# ---------------------------------------------------------------------------
def _mlp_kernel_resident(x_ref, w1_ref, b1_ref, w2_ref, b2_ref, o_ref, *,
                         approximate_gelu):
    """Whole hidden dim resident: one fused pass, no accumulator scratch."""
    h = jnp.dot(x_ref[...], w1_ref[...], preferred_element_type=jnp.float32)
    h = _gelu(h + b1_ref[...].astype(jnp.float32), approximate_gelu)
    y = jnp.dot(h.astype(w2_ref.dtype), w2_ref[...],
                preferred_element_type=jnp.float32)
    # Dropout with p=0.0 is the identity (eval-mode semantics).
    o_ref[...] = (y + b2_ref[...].astype(jnp.float32)).astype(o_ref.dtype)


def _mlp_kernel_tiled(x_ref, w1_ref, b1_ref, w2_ref, b2_ref, o_ref, acc_ref, *,
                      approximate_gelu):
    """Hidden dim tiled over grid axis 1 with an f32 VMEM accumulator."""
    k = pl.program_id(1)

    @pl.when(k == 0)
    def _():
        acc_ref[...] = jnp.zeros_like(acc_ref)

    h = jnp.dot(x_ref[...], w1_ref[...], preferred_element_type=jnp.float32)
    h = _gelu(h + b1_ref[...].astype(jnp.float32), approximate_gelu)
    acc_ref[...] += jnp.dot(h.astype(w2_ref.dtype), w2_ref[...],
                            preferred_element_type=jnp.float32)

    @pl.when(k == pl.num_programs(1) - 1)
    def _():
        o_ref[...] = (acc_ref[...] + b2_ref[...].astype(jnp.float32)
                      ).astype(o_ref.dtype)


# ---------------------------------------------------------------------------
# Tiling / VMEM plan
# ---------------------------------------------------------------------------
class _Plan(NamedTuple):
    tm: int
    tk: int
    cin_p: int
    hp: int
    cout_p: int
    resident: bool
    vmem_limit: int


def _vmem_capacity_bytes():
    try:
        return int(pltpu.get_tpu_info().vmem_capacity_bytes)
    except Exception:
        return 64 << 20          # conservative: assume a v7x-sized (64 MiB) VMEM


def _make_plan(M, C_in, H, C_out, act_bytes, w_bytes, tm, tk):
    cin_p = _round_up(C_in, 128)
    hp0 = _round_up(H, 128)
    cout_p = _round_up(C_out, 128)

    cap = _vmem_capacity_bytes()
    small_vmem = cap <= (64 << 20)                       # v7x-class TensorCore
    budget = (40 << 20) if small_vmem else (64 << 20)    # working-set budget
    budget = min(budget, max(8 << 20, cap - (24 << 20)))
    vmem_limit = min(cap, budget + (16 << 20))           # scoped-VMEM request

    # ---- M tile: as large as the budget allows -----------------------------
    if tm is None:
        tm_ = min(512 if small_vmem else 1024, _round_up(M, 8))
        # Keep >= 2 M tiles so both TensorCores of a 2-core chip (v7x) get work.
        if M >= 256 and _cdiv(M, tm_) < 2:
            tm_ = _round_up(_cdiv(M, 2), 8)
        auto_tm = True
    else:
        tm_ = _round_up(max(tm, 8), 8)
        auto_tm = False

    def resident_bytes(tm_v):
        # w1/b1/w2/b2 are single-buffered (constant block index).
        w = (cin_p * hp0 + hp0 * cout_p + hp0 + cout_p) * w_bytes
        act = 2 * tm_v * (cin_p + cout_p) * act_bytes    # x/out double-buffered
        h = 2 * tm_v * hp0 * 4                           # f32 intermediate + temps
        return w + act + h

    def tiled_bytes(tm_v, tk_v):
        w = 2 * (cin_p * tk_v + tk_v * cout_p + tk_v) * w_bytes + cout_p * w_bytes
        act = 2 * tm_v * (cin_p + cout_p) * act_bytes
        acc = tm_v * cout_p * 4
        h = 2 * tm_v * tk_v * 4
        return w + act + acc + h

    if tk is not None:
        tk_ = min(_round_up(tk, 128), hp0)
        hp = _round_up(H, tk_)
        return _Plan(tm_, tk_, cin_p, hp, cout_p, hp // tk_ == 1, vmem_limit)

    # Prefer the resident-hidden single-pass path whenever it fits: the FFN
    # weights are then DMA'd from HBM once for the whole grid instead of once
    # per M tile (the dominant HBM cost for large M).
    tm_res = tm_
    while auto_tm and tm_res > 128 and resident_bytes(tm_res) > budget:
        tm_res = max(128, _round_up(tm_res // 2, 8))
    if resident_bytes(tm_res) <= budget:
        return _Plan(tm_res, hp0, cin_p, hp0, cout_p, True, vmem_limit)

    # Otherwise tile the hidden dim (bounds weight-block residency and the live
    # f32 intermediate), shrinking tk then tm until the working set fits.
    # TODO(synk): very wide Cout (>=~2048 f32) on v7x would also want a Cout
    # grid axis; not implemented here.
    tk_ = min(hp0, 512)
    while tk_ > 128 and tiled_bytes(tm_, tk_) > budget:
        tk_ = max(128, _round_up(tk_ // 2, 128))
    while auto_tm and tm_ > 128 and tiled_bytes(tm_, tk_) > budget:
        tm_ = max(128, _round_up(tm_ // 2, 8))
    hp = _round_up(H, tk_)
    return _Plan(tm_, tk_, cin_p, hp, cout_p, hp // tk_ == 1, vmem_limit)


def _const_spec(block_shape, index_map, single_buffer):
    if single_buffer:
        # Constant block index -> one VMEM buffer is enough (halves the VMEM
        # footprint of resident weights vs. default double-buffering).
        return pl.BlockSpec(block_shape, index_map, pipeline_mode=pl.Buffered(1))
    return pl.BlockSpec(block_shape, index_map)


# ---------------------------------------------------------------------------
# Forward
# ---------------------------------------------------------------------------
@functools.partial(jax.jit,
                   static_argnames=("plan", "approximate_gelu", "single_buffer"))
def _mlp_forward_impl(x2d, w1, b1, w2, b2, *, plan, approximate_gelu,
                      single_buffer):
    p = plan
    M, _ = x2d.shape
    C_out = w2.shape[1]

    def pad2d(a, rows, cols):
        pr, pc = rows - a.shape[0], cols - a.shape[1]
        return jnp.pad(a, ((0, pr), (0, pc))) if (pr or pc) else a

    # Feature dims zero-padded to lane multiples (exact).  M is NOT padded:
    # Pallas clips the partial last M block on writeback, so ragged sequence
    # lengths cost no extra HBM pass over the activations.
    xp = pad2d(x2d, M, p.cin_p)
    w1p = pad2d(w1, p.cin_p, p.hp)
    b1p = pad2d(b1, 1, p.hp)
    w2p = pad2d(w2, p.hp, p.cout_p)
    b2p = pad2d(b2, 1, p.cout_p)

    grid_m = _cdiv(M, p.tm)

    if p.resident:
        kernel = functools.partial(_mlp_kernel_resident,
                                   approximate_gelu=approximate_gelu)
        grid = (grid_m,)
        in_specs = [
            pl.BlockSpec((p.tm, p.cin_p), lambda i: (i, 0)),          # x tile
            _const_spec((p.cin_p, p.hp), lambda i: (0, 0), single_buffer),
            _const_spec((1, p.hp), lambda i: (0, 0), single_buffer),
            _const_spec((p.hp, p.cout_p), lambda i: (0, 0), single_buffer),
            _const_spec((1, p.cout_p), lambda i: (0, 0), single_buffer),
        ]
        out_specs = pl.BlockSpec((p.tm, p.cout_p), lambda i: (i, 0))
        scratch_shapes = []
        dim_sem = ("parallel",)
    else:
        kernel = functools.partial(_mlp_kernel_tiled,
                                   approximate_gelu=approximate_gelu)
        grid = (grid_m, p.hp // p.tk)
        in_specs = [
            pl.BlockSpec((p.tm, p.cin_p), lambda i, k: (i, 0)),       # x tile
            pl.BlockSpec((p.cin_p, p.tk), lambda i, k: (0, k)),       # w1 K-slice
            pl.BlockSpec((1, p.tk), lambda i, k: (0, k)),             # b1 K-slice
            pl.BlockSpec((p.tk, p.cout_p), lambda i, k: (k, 0)),      # w2 K-slice
            _const_spec((1, p.cout_p), lambda i, k: (0, 0), single_buffer),
        ]
        out_specs = pl.BlockSpec((p.tm, p.cout_p), lambda i, k: (i, 0))
        scratch_shapes = [pltpu.VMEM((p.tm, p.cout_p), jnp.float32)]
        dim_sem = ("parallel", "arbitrary")

    out2d = pl.pallas_call(
        kernel,
        out_shape=jax.ShapeDtypeStruct((M, p.cout_p), x2d.dtype),
        grid_spec=pltpu.PrefetchScalarGridSpec(
            num_scalar_prefetch=0,
            grid=grid,
            in_specs=in_specs,
            out_specs=out_specs,
            scratch_shapes=scratch_shapes,
        ),
        compiler_params=pltpu.CompilerParams(
            dimension_semantics=dim_sem,
            vmem_limit_bytes=p.vmem_limit,
        ),
    )(xp, w1p, b1p, w2p, b2p)

    return out2d if p.cout_p == C_out else out2d[:, :C_out]


def mlp_forward(x, w1, b1, w2, b2, *, tm=None, tk=None, approximate_gelu=False):
    """x: (..., C_in) -> (..., C_out).  Weights stored as (in, out)."""
    *lead, C_in = x.shape
    M = math.prod(lead) if lead else 1
    H = w1.shape[1]
    C_out = w2.shape[1]

    plan = _make_plan(M, C_in, H, C_out,
                      jnp.dtype(x.dtype).itemsize, jnp.dtype(w1.dtype).itemsize,
                      tm, tk)
    args = (x.reshape(M, C_in), w1, jnp.reshape(b1, (1, H)),
            w2, jnp.reshape(b2, (1, C_out)))
    kwargs = dict(plan=plan, approximate_gelu=bool(approximate_gelu))
    try:
        out2d = _mlp_forward_impl(*args, single_buffer=True, **kwargs)
    except Exception:
        # Fallback for jax builds where BlockSpec.pipeline_mode / pl.Buffered
        # is not supported on the TPU pallas_call path.
        out2d = _mlp_forward_impl(*args, single_buffer=False, **kwargs)
    return out2d.reshape(*lead, C_out)


# ---------------------------------------------------------------------------
# Params / reference
# ---------------------------------------------------------------------------
def init_mlp_params(key, in_features, hidden_features=None, out_features=None,
                    dtype=jnp.float32):
    """nn.Linear-style uniform(+/- 1/sqrt(fan_in)) init; weights as (in, out)."""
    out_features = out_features or in_features
    hidden_features = hidden_features or in_features
    k1, k2, k3, k4 = jax.random.split(key, 4)

    def uni(k, shape, bound):
        u = jax.random.uniform(k, shape, jnp.float32, minval=-bound, maxval=bound)
        return u.astype(dtype)

    b1 = 1.0 / (in_features ** 0.5)
    b2 = 1.0 / (hidden_features ** 0.5)
    return (uni(k1, (in_features, hidden_features), b1),
            uni(k2, (1, hidden_features), b1),
            uni(k3, (hidden_features, out_features), b2),
            uni(k4, (1, out_features), b2))


def mlp_reference(x, w1, b1, w2, b2):
    """Pure-JAX reference (exact erf GELU)."""
    h = jnp.dot(x, w1) + b1[0]
    h = 0.5 * h * (1.0 + jax.lax.erf(h / jnp.sqrt(2.0)))
    return jnp.dot(h, w2) + b2[0]


# TODO(synk): nn.Dropout with p>0 in training mode (RNG masking) is not
# implemented; module default drop=0.0 is the identity, matched here.

if __name__ == "__main__":
    key = jax.random.PRNGKey(0)
    k1, k2, k3, k4, k5, k6 = jax.random.split(key, 6)

    # --- Test 1: small ViT-FFN shapes, default (resident-weight) path.
    B, N, C = 2, 8, 32
    H = 4 * C
    x = jax.random.normal(k1, (B, N, C), jnp.float32)
    w1, b1, w2, b2 = init_mlp_params(k2, C, hidden_features=H)
    out = jax.block_until_ready(mlp_forward(x, w1, b1, w2, b2))
    ref = mlp_reference(x, w1, b1, w2, b2)
    assert out.shape == (B, N, C), out.shape
    assert jnp.allclose(out, ref, atol=1e-5, rtol=1e-5), "test1 mismatch"

    # --- Test 2: ragged M and channels with explicit tiny tiles -> multi-k
    # accumulator path and a partial last M block (validates clipped writeback).
    B2, N2, Cin2, H2, Cout2 = 2, 9, 40, 256, 24
    x2 = jax.random.normal(k3, (B2, N2, Cin2), jnp.float32)
    w1b, b1b, w2b, b2b = init_mlp_params(k4, Cin2, hidden_features=H2,
                                         out_features=Cout2)
    out2 = jax.block_until_ready(
        mlp_forward(x2, w1b, b1b, w2b, b2b, tm=8, tk=128))
    ref2 = mlp_reference(x2, w1b, b1b, w2b, b2b)
    assert out2.shape == (B2, N2, Cout2), out2.shape
    assert jnp.allclose(out2, ref2, atol=1e-4, rtol=1e-4), "test2 mismatch"

    # --- Test 3: bf16 activations/weights (native MXU path), ragged sequence
    # length, resident-weight path with a partial M block.
    B3, N3, C3, H3 = 2, 17, 128, 512
    x3 = jax.random.normal(k5, (B3, N3, C3), jnp.float32).astype(jnp.bfloat16)
    w1c, b1c, w2c, b2c = init_mlp_params(k6, C3, hidden_features=H3,
                                         dtype=jnp.bfloat16)
    out3 = jax.block_until_ready(mlp_forward(x3, w1c, b1c, w2c, b2c))
    ref3 = mlp_reference(x3.astype(jnp.float32), w1c.astype(jnp.float32),
                         b1c.astype(jnp.float32), w2c.astype(jnp.float32),
                         b2c.astype(jnp.float32))
    assert out3.shape == (B3, N3, C3), out3.shape
    assert jnp.allclose(out3.astype(jnp.float32), ref3,
                        atol=5e-2, rtol=5e-2), "test3 mismatch"

    print("KERNEL_OK")
</pallas_src>

<mosaic_0001>
module attributes {stable_mosaic.version = 11 : i64} {
  func.func @_mlp_kernel_resident(%arg0: i32, %arg1: memref<16x128xf32, #tpu.memory_space<vmem>>, %arg2: memref<128x128xf32, #tpu.memory_space<vmem>>, %arg3: memref<1x128xf32, #tpu.memory_space<vmem>>, %arg4: memref<128x128xf32, #tpu.memory_space<vmem>>, %arg5: memref<1x128xf32, #tpu.memory_space<vmem>>, %arg6: memref<16x128xf32, #tpu.memory_space<vmem>>) attributes {dimension_semantics = [#tpu.dimension_semantics<parallel>], iteration_bounds = array<i64: 1>, scalar_prefetch = 0 : i64, scratch_operands = 0 : i64, tpu.core_type = #tpu.core_type<tc>, window_params = [{transform_indices = @transform_0, window_bounds = array<i64: 16, 128>}, {pipeline_mode = #tpu.pipeline_mode<synchronous>, transform_indices = @transform_1, window_bounds = array<i64: 128, 128>}, {pipeline_mode = #tpu.pipeline_mode<synchronous>, transform_indices = @transform_2, window_bounds = array<i64: 1, 128>}, {pipeline_mode = #tpu.pipeline_mode<synchronous>, transform_indices = @transform_3, window_bounds = array<i64: 128, 128>}, {pipeline_mode = #tpu.pipeline_mode<synchronous>, transform_indices = @transform_4, window_bounds = array<i64: 1, 128>}, {transform_indices = @transform_5, window_bounds = array<i64: 16, 128>}]} {
    %c0 = arith.constant 0 : index
    %c0_0 = arith.constant 0 : index
    %0 = vector.load %arg1[%c0, %c0_0] : memref<16x128xf32, #tpu.memory_space<vmem>>, vector<16x128xf32>
    %c0_1 = arith.constant 0 : index
    %c0_2 = arith.constant 0 : index
    %1 = vector.load %arg2[%c0_1, %c0_2] : memref<128x128xf32, #tpu.memory_space<vmem>>, vector<128x128xf32>
    %cst = arith.constant dense<0.000000e+00> : vector<16x128xf32>
    %2 = tpu.matmul %0, %1, %cst {dimension_numbers = #tpu.dot_dimension_numbers<[1], [0], [0], [1], [0, 0, 1, 1], [], []>} : vector<16x128xf32>, vector<128x128xf32>, vector<16x128xf32> -> vector<16x128xf32>
    %c0_3 = arith.constant 0 : index
    %c0_4 = arith.constant 0 : index
    %3 = vector.load %arg3[%c0_3, %c0_4] : memref<1x128xf32, #tpu.memory_space<vmem>>, vector<1x128xf32>
    %4 = vector.broadcast %3 : vector<1x128xf32> to vector<16x128xf32>
    %5 = arith.addf %2, %4 : vector<16x128xf32>
    %cst_5 = arith.constant 5.000000e-01 : f32
    %6 = vector.broadcast %cst_5 : f32 to vector<16x128xf32>
    %7 = arith.mulf %6, %5 : vector<16x128xf32>
    %cst_6 = arith.constant 0.707106769 : f32
    %8 = vector.broadcast %cst_6 : f32 to vector<16x128xf32>
    %9 = arith.mulf %5, %8 : vector<16x128xf32>
    %10 = math.erf %9 : vector<16x128xf32>
    %cst_7 = arith.constant 1.000000e+00 : f32
    %11 = vector.broadcast %cst_7 : f32 to vector<16x128xf32>
    %12 = arith.addf %11, %10 : vector<16x128xf32>
    %13 = arith.mulf %7, %12 : vector<16x128xf32>
    %c0_8 = arith.constant 0 : index
    %c0_9 = arith.constant 0 : index
    %14 = vector.load %arg4[%c0_8, %c0_9] : memref<128x128xf32, #tpu.memory_space<vmem>>, vector<128x128xf32>
    %cst_10 = arith.constant dense<0.000000e+00> : vector<16x128xf32>
    %15 = tpu.matmul %13, %14, %cst_10 {dimension_numbers = #tpu.dot_dimension_numbers<[1], [0], [0], [1], [0, 0, 1, 1], [], []>} : vector<16x128xf32>, vector<128x128xf32>, vector<16x128xf32> -> vector<16x128xf32>
    %c0_11 = arith.constant 0 : index
    %c0_12 = arith.constant 0 : index
    %16 = vector.load %arg5[%c0_11, %c0_12] : memref<1x128xf32, #tpu.memory_space<vmem>>, vector<1x128xf32>
    %17 = vector.broadcast %16 : vector<1x128xf32> to vector<16x128xf32>
    %18 = arith.addf %15, %17 : vector<16x128xf32>
    %c0_13 = arith.constant 0 : index
    %c0_14 = arith.constant 0 : index
    %19 = vector.load %arg6[%c0_13, %c0_14] : memref<16x128xf32, #tpu.memory_space<vmem>>, vector<16x128xf32>
    tpu.vector_store %arg6[%c0_13, %c0_14], %18 {strides = array<i32>} : memref<16x128xf32, #tpu.memory_space<vmem>>, vector<16x128xf32>,
    return
  }
  func.func @transform_0(%arg0: i32) -> (i32, i32) {
    %c0_i32 = arith.constant 0 : i32
    %c0_i32_0 = arith.constant 0 : i32
    return %arg0, %c0_i32 : i32, i32
  }
  func.func @transform_1(%arg0: i32) -> (i32, i32) {
    %c0_i32 = arith.constant 0 : i32
    %c0_i32_0 = arith.constant 0 : i32
    %c0_i32_1 = arith.constant 0 : i32
    return %c0_i32, %c0_i32_0 : i32, i32
  }
  func.func @transform_2(%arg0: i32) -> (i32, i32) {
    %c0_i32 = arith.constant 0 : i32
    %c0_i32_0 = arith.constant 0 : i32
    %c0_i32_1 = arith.constant 0 : i32
    return %c0_i32, %c0_i32_0 : i32, i32
  }
  func.func @transform_3(%arg0: i32) -> (i32, i32) {
    %c0_i32 = arith.constant 0 : i32
    %c0_i32_0 = arith.constant 0 : i32
    %c0_i32_1 = arith.constant 0 : i32
    return %c0_i32, %c0_i32_0 : i32, i32
  }
  func.func @transform_4(%arg0: i32) -> (i32, i32) {
    %c0_i32 = arith.constant 0 : i32
    %c0_i32_0 = arith.constant 0 : i32
    %c0_i32_1 = arith.constant 0 : i32
    return %c0_i32, %c0_i32_0 : i32, i32
  }
  func.func @transform_5(%arg0: i32) -> (i32, i32) {
    %c0_i32 = arith.constant 0 : i32
    %c0_i32_0 = arith.constant 0 : i32
    return %arg0, %c0_i32 : i32, i32
  }
}

module attributes {stable_mosaic.version = 11 : i64} {
  func.func @_mlp_kernel_resident(%arg0: i32, %arg1: memref<16x128xf32, #tpu.memory_space<vmem>>, %arg2: memref<128x128xf32, #tpu.memory_space<vmem>>, %arg3: memref<1x128xf32, #tpu.memory_space<vmem>>, %arg4: memref<128x128xf32, #tpu.memory_space<vmem>>, %arg5: memref<1x128xf32, #tpu.memory_space<vmem>>, %arg6: memref<16x128xf32, #tpu.memory_space<vmem>>) attributes {dimension_semantics = [#tpu.dimension_semantics<parallel>], iteration_bounds = array<i64: 1>, scalar_prefetch = 0 : i64, scratch_operands = 0 : i64, tpu.core_type = #tpu.core_type<tc>, window_params = [{transform_indices = @transform_0, window_bounds = array<i64: 16, 128>}, {pipeline_mode = #tpu.pipeline_mode<synchronous>, transform_indices = @transform_1, window_bounds = array<i64: 128, 128>}, {pipeline_mode = #tpu.pipeline_mode<synchronous>, transform_indices = @transform_2, window_bounds = array<i64: 1, 128>}, {pipeline_mode = #tpu.pipeline_mode<synchronous>, transform_indices = @transform_3, window_bounds = array<i64: 128, 128>}, {pipeline_mode = #tpu.pipeline_mode<synchronous>, transform_indices = @transform_4, window_bounds = array<i64: 1, 128>}, {transform_indices = @transform_5, window_bounds = array<i64: 16, 128>}]} {
    %c0 = arith.constant 0 : index
    %c0_0 = arith.constant 0 : index
    %0 = vector.load %arg1[%c0, %c0_0] : memref<16x128xf32, #tpu.memory_space<vmem>>, vector<16x128xf32>
    %c0_1 = arith.constant 0 : index
    %c0_2 = arith.constant 0 : index
    %1 = vector.load %arg2[%c0_1, %c0_2] : memref<128x128xf32, #tpu.memory_space<vmem>>, vector<128x128xf32>
    %cst = arith.constant dense<0.000000e+00> : vector<16x128xf32>
    %2 = tpu.matmul %0, %1, %cst {dimension_numbers = #tpu.dot_dimension_numbers<[1], [0], [0], [1], [0, 0, 1, 1], [], []>} : vector<16x128xf32>, vector<128x128xf32>, vector<16x128xf32> -> vector<16x128xf32>
    %c0_3 = arith.constant 0 : index
    %c0_4 = arith.constant 0 : index
    %3 = vector.load %arg3[%c0_3, %c0_4] : memref<1x128xf32, #tpu.memory_space<vmem>>, vector<1x128xf32>
    %4 = vector.broadcast %3 : vector<1x128xf32> to vector<16x128xf32>
    %5 = arith.addf %2, %4 : vector<16x128xf32>
    %cst_5 = arith.constant 5.000000e-01 : f32
    %6 = vector.broadcast %cst_5 : f32 to vector<16x128xf32>
    %7 = arith.mulf %6, %5 : vector<16x128xf32>
    %cst_6 = arith.constant 0.707106769 : f32
    %8 = vector.broadcast %cst_6 : f32 to vector<16x128xf32>
    %9 = arith.mulf %5, %8 : vector<16x128xf32>
    %10 = math.erf %9 : vector<16x128xf32>
    %cst_7 = arith.constant 1.000000e+00 : f32
    %11 = vector.broadcast %cst_7 : f32 to vector<16x128xf32>
    %12 = arith.addf %11, %10 : vector<16x128xf32>
    %13 = arith.mulf %7, %12 : vector<16x128xf32>
    %c0_8 = arith.constant 0 : index
    %c0_9 = arith.constant 0 : index
    %14 = vector.load %arg4[%c0_8, %c0_9] : memref<128x128xf32, #tpu.memory_space<vmem>>, vector<128x128xf32>
    %cst_10 = arith.constant dense<0.000000e+00> : vector<16x128xf32>
    %15 = tpu.matmul %13, %14, %cst_10 {dimension_numbers = #tpu.dot_dimension_numbers<[1], [0], [0], [1], [0, 0, 1, 1], [], []>} : vector<16x128xf32>, vector<128x128xf32>, vector<16x128xf32> -> vector<16x128xf32>
    %c0_11 = arith.constant 0 : index
    %c0_12 = arith.constant 0 : index
    %16 = vector.load %arg5[%c0_11, %c0_12] : memref<1x128xf32, #tpu.memory_space<vmem>>, vector<1x128xf32>
    %17 = vector.broadcast %16 : vector<1x128xf32> to vector<16x128xf32>
    %18 = arith.addf %15, %17 : vector<16x128xf32>
    %c0_13 = arith.constant 0 : index
    %c0_14 = arith.constant 0 : index
    %19 = vector.load %arg6[%c0_13, %c0_14] : memref<16x128xf32, #tpu.memory_space<vmem>>, vector<16x128xf32>
    tpu.vector_store %arg6[%c0_13, %c0_14], %18 {strides = array<i32>} : memref<16x128xf32, #tpu.memory_space<vmem>>, vector<16x128xf32>,
    return
  }
  func.func @transform_0(%arg0: i32) -> (i32, i32) {
    %c0_i32 = arith.constant 0 : i32
    %c0_i32_0 = arith.constant 0 : i32
    return %arg0, %c0_i32 : i32, i32
  }
  func.func @transform_1(%arg0: i32) -> (i32, i32) {
    %c0_i32 = arith.constant 0 : i32
    %c0_i32_0 = arith.constant 0 : i32
    %c0_i32_1 = arith.constant 0 : i32
    return %c0_i32, %c0_i32_0 : i32, i32
  }
  func.func @transform_2(%arg0: i32) -> (i32, i32) {
    %c0_i32 = arith.constant 0 : i32
    %c0_i32_0 = arith.constant 0 : i32
    %c0_i32_1 = arith.constant 0 : i32
    return %c0_i32, %c0_i32_0 : i32, i32
  }
  func.func @transform_3(%arg0: i32) -> (i32, i32) {
    %c0_i32 = arith.constant 0 : i32
    %c0_i32_0 = arith.constant 0 : i32
    %c0_i32_1 = arith.constant 0 : i32
    return %c0_i32, %c0_i32_0 : i32, i32
  }
  func.func @transform_4(%arg0: i32) -> (i32, i32) {
    %c0_i32 = arith.constant 0 : i32
    %c0_i32_0 = arith.constant 0 : i32
    %c0_i32_1 = arith.constant 0 : i32
    return %c0_i32, %c0_i32_0 : i32, i32
  }
  func.func @transform_5(%arg0: i32) -> (i32, i32) {
    %c0_i32 = arith.constant 0 : i32
    %c0_i32_0 = arith.constant 0 : i32
    return %arg0, %c0_i32 : i32, i32
  }
}

</mosaic_0001>

<bundles_post_ra>
// kernel: _mlp_forward_impl.1
= control target key start
LH: loop header
LB: loop body
LE: loop exit
PB: predicated region body
PF: predicated region fallthrough
CT: control target
= control target key end

     0   :  { %s528_s0 = inlined_call_operand.vmem [shape: f32[16,128], index: 0, kind: input, shape index: {}]   ;;  %s529_s1 = inlined_call_operand.vmem [shape: f32[128,128], index: 1, kind: input, shape index: {}]   ;;  %s530_s2 = inlined_call_operand.vmem [shape: f32[1,128], index: 2, kind: input, shape index: {}]   ;;  %s531_s3 = inlined_call_operand.vmem [shape: f32[128,128], index: 3, kind: input, shape index: {}]   ;;  %s532_s4 = inlined_call_operand.vmem [shape: f32[1,128], index: 4, kind: input, shape index: {}]   ;;  %s533_s5 = inlined_call_operand.hbm [shape: f32[16,128], index: 5, kind: output, shape index: {}]  }
   0x1   :  { %v38_v0 = vld [vmem:[%s529_s1 + $0x78] sm:$0xff]  ;;  %v37_v1 = vld [vmem:[%s529_s1 + $0x70] sm:$0xff]  ;;  %v36_v2 = vld [vmem:[%s529_s1 + $0x68] sm:$0xff] }
   0x2   :  { %285 = vmatprep.subr.mxu0 %v38_v0  ;;  %v35_v3 = vld [vmem:[%s529_s1 + $0x60] sm:$0xff]  ;;  %v34_v5 = vld [vmem:[%s529_s1 + $0x58] sm:$0xff]  ;;  %v145_v7 = vld [vmem:[%s531_s3 + $0x70] sm:$0xff] }
   0x3   :  { %286 = vmatpush3.msra.mxu0 %v38_v0  ;;  %v21_v4 = vld [vmem:[%s528_s0] sm:$0xff]  ;;  %v146_v6 = vld [vmem:[%s531_s3 + $0x78] sm:$0xff] }
   0x4   :  { %287 = vmatprep.subr.mxu0 %v37_v1  ;;  %317 = vmatprep.mubr.f32.mxu0 %v21_v4 }
   0x5   :  { %288 = vmatpush3.msra.mxu0 %v37_v1  ;;  %320 = vmatprep.subr.mxu1 %v146_v6 }
   0x6   :  { %289 = vmatprep.subr.mxu0 %v36_v2 }
   0x7   :  { %290 = vmatpush3.msra.mxu0 %v36_v2 }
   0x8   :  { %291 = vmatprep.subr.mxu0 %v35_v3 }
   0x9   :  { %10 = vsyncpa [#allocation3], 0  ;;  %292 = vmatpush3.msra.mxu0 %v35_v3  ;;  %v33_v8 = vld [vmem:[%s529_s1 + $0x50] sm:$0xff]  ;;  %321 = vmatpush3.msra.mxu1 %v146_v6  ;;  %v144_v9 = vld [vmem:[%s531_s3 + $0x68] sm:$0xff]  ;;  %s384_s11 = smov [#allocation2]  }
   0xa   :  { %293 = vmatprep.subr.mxu0 %v34_v5  ;;  %322 = vmatprep.subr.mxu1 %v145_v7  ;;  %v32_v10 = vld [vmem:[%s529_s1 + $0x48] sm:$0xff]  ;;  %v31_v11 = vld [vmem:[%s529_s1 + $0x40] sm:$0xff]  ;;  %v30_v12 = vld [vmem:[%s529_s1 + $0x38] sm:$0xff]  ;;  %s236_s12 = sshll.u32 %s384_s11, 4  ;;  %s237_s12 = int_to_ptr.vmem [resolvable:$true] %s236_s12 }
   0xb   :  { %294 = vmatpush3.msra.mxu0 %v34_v5  ;;  %323 = vmatpush3.msra.mxu1 %v145_v7  ;;  %v29_v13 = vld [vmem:[%s529_s1 + $0x30] sm:$0xff]  ;;  %v28_v14 = vld [vmem:[%s529_s1 + $0x28] sm:$0xff]  ;;  %v27_v15 = vld [vmem:[%s529_s1 + $0x20] sm:$0xff]  ;;  %s362_s13 = scalar_lea.vmem %s237_s12, 256  ;;  %p367_p1 = scmp.lt.s32.totalorder %s237_s12, %s237_s12 }
   0xc   :  { %295 = vmatprep.subr.mxu0 %v33_v8  ;;  %324 = vmatprep.subr.mxu1 %v144_v9  ;;  %v26_v16 = vld [vmem:[%s529_s1 + $0x18] sm:$0xff]  ;;  %v25_v17 = vld [vmem:[%s529_s1 + $0x10] sm:$0xff]  ;;  %v24_v18 = vld [vmem:[%s529_s1 + $0x8] sm:$0xff]  ;;  %p363_p0 = scmp.ne.s32.totalorder %s237_s12, %s362_s13  ;;  %p368_p2 = scmp.lt.s32.totalorder %s362_s13, %s362_s13 }
   0xd   :  { %296 = vmatpush3.msra.mxu0 %v33_v8  ;;  %325 = vmatpush3.msra.mxu1 %v144_v9  ;;  %v23_v19 = vld [vmem:[%s529_s1] sm:$0xff]  ;;  %v22_v20 = vld [vmem:[%s528_s0 + $0x8] sm:$0xff]  ;;  %v142_v22 = vld [vmem:[%s531_s3 + $0x58] sm:$0xff] }
   0xe   :  { %297 = vmatprep.subr.mxu0 %v32_v10  ;;  %v143_v21 = vld [vmem:[%s531_s3 + $0x60] sm:$0xff]  ;;  %v141_v23 = vld [vmem:[%s531_s3 + $0x50] sm:$0xff]  ;;  %v140_v24 = vld [vmem:[%s531_s3 + $0x48] sm:$0xff]  ;;  %p369_p3 = por %p368_p2, %p367_p1 }
   0xf   :  { %298 = vmatpush3.msra.mxu0 %v32_v10  ;;  %326 = vmatprep.subr.mxu1 %v143_v21  ;;  %v139_v25 = vld [vmem:[%s531_s3 + $0x40] sm:$0xff]  ;;  %v138_v26 = vld [vmem:[%s531_s3 + $0x38] sm:$0xff]  ;;  %v137_v27 = vld [vmem:[%s531_s3 + $0x30] sm:$0xff] }
  0x10   :  { %299 = vmatprep.subr.mxu0 %v31_v11  ;;  %327 = vmatpush3.msra.mxu1 %v143_v21  ;;  %v136_v28 = vld [vmem:[%s531_s3 + $0x28] sm:$0xff]  ;;  %v135_v29 = vld [vmem:[%s531_s3 + $0x20] sm:$0xff]  ;;  %v134_v30 = vld [vmem:[%s531_s3 + $0x18] sm:$0xff]  ;;  %p370_p4 = pnand %p369_p3, %p363_p0 }
  0x11   :  { %300 = vmatpush3.msra.mxu0 %v31_v11  ;;  %328 = vmatprep.subr.mxu1 %v142_v22  ;;  %v133_v31 = vld [vmem:[%s531_s3 + $0x10] sm:$0xff]  ;;  %v132_v32 = vld [vmem:[%s531_s3 + $0x8] sm:$0xff]  ;;  %v131_v33 = vld [vmem:[%s531_s3] sm:$0xff] }
  0x12   :  { %301 = vmatprep.subr.mxu0 %v30_v12  ;;  %329 = vmatpush3.msra.mxu1 %v142_v22  ;;  %v247_v34 = vld [vmem:[%s530_s2] ss:$0 sm:$0xff] }
  0x13   :  { %302 = vmatpush3.msra.mxu0 %v30_v12  ;;  %330 = vmatprep.subr.mxu1 %v141_v23  ;;  %v248_v49 = vld [vmem:[%s532_s4] ss:$0 sm:$0xff] }
  0x14   :  { %303 = vmatprep.subr.mxu0 %v29_v13  ;;  %331 = vmatpush3.msra.mxu1 %v141_v23 }
  0x15   :  { %304 = vmatpush3.msra.mxu0 %v29_v13  ;;  %332 = vmatprep.subr.mxu1 %v140_v24 }
  0x16   :  { %305 = vmatprep.subr.mxu0 %v28_v14  ;;  %333 = vmatpush3.msra.mxu1 %v140_v24 }
  0x17   :  { %306 = vmatpush3.msra.mxu0 %v28_v14  ;;  %334 = vmatprep.subr.mxu1 %v139_v25 }
  0x18   :  { %307 = vmatprep.subr.mxu0 %v27_v15  ;;  %335 = vmatpush3.msra.mxu1 %v139_v25 }
  0x19   :  { %308 = vmatpush3.msra.mxu0 %v27_v15  ;;  %336 = vmatprep.subr.mxu1 %v138_v26 }
  0x1a   :  { %309 = vmatprep.subr.mxu0 %v26_v16  ;;  %337 = vmatpush3.msra.mxu1 %v138_v26 }
  0x1b   :  { %310 = vmatpush3.msra.mxu0 %v26_v16  ;;  %338 = vmatprep.subr.mxu1 %v137_v27 }
  0x1c   :  { %311 = vmatprep.subr.mxu0 %v25_v17  ;;  %339 = vmatpush3.msra.mxu1 %v137_v27 }
  0x1d   :  { %312 = vmatpush3.msra.mxu0 %v25_v17  ;;  %340 = vmatprep.subr.mxu1 %v136_v28 }
  0x1e   :  { %313 = vmatprep.subr.mxu0 %v24_v18  ;;  %341 = vmatpush3.msra.mxu1 %v136_v28 }
  0x1f   :  { %314 = vmatpush3.msra.mxu0 %v24_v18  ;;  %342 = vmatprep.subr.mxu1 %v135_v29 }
  0x20   :  { %315 = vmatprep.subr.mxu0 %v23_v19  ;;  %343 = vmatpush3.msra.mxu1 %v135_v29 }
  0x21   :  { %316 = vmatpush3.msra.mxu0 %v23_v19  ;;  %344 = vmatprep.subr.mxu1 %v134_v30 }
  0x22   :  { %318 = vmatmul.mubr.f32.vlgmr.msra.gmra.mxu0 %v22_v20  ;;  %345 = vmatpush3.msra.mxu1 %v134_v30 }
  0x23   :  { %346 = vmatprep.subr.mxu1 %v133_v31 }
  0x24   :  { %347 = vmatpush3.msra.mxu1 %v133_v31 }
  0x25   :  { %348 = vmatprep.subr.mxu1 %v132_v32 }
  0x26   :  { %349 = vmatpush3.msra.mxu1 %v132_v32 }
  0x27   :  { %350 = vmatprep.subr.mxu1 %v131_v33 }
  0x28   :  { %351 = vmatpush3.msra.mxu1 %v131_v33 }
  0xe2   :  { %v319_v35 = vpop.f32.mrf.mxu0 }
  0xe3   :  { %v118_v36 = vadd.f32 %v319_v35, %v247_v34 }
  0xe4   :  { %v112_v37 = vpop.f32.mrf.mxu0 }
  0xe5   :  { %v124_v38 = vmul.f32 0.70710677, %v118_v36  ;;  %v113_v39 = vadd.f32 %v247_v34, %v112_v37  ;;  %v122_v46 = vmul.f32 0.5, %v118_v36 }
  0xe7   :  { %358 = verf.f32 %v124_v38  ;;  %v123_v40 = vmul.f32 0.70710677, %v113_v39  ;;  %v121_v44 = vmul.f32 0.5, %v113_v39 }
  0xe9   :  { %360 = verf.f32 %v123_v40 }
  0xf4   :  { %v359_v41 = vpop.eup %358 }
  0xf5   :  { %v128_v43 = vadd.f32 1.0, %v359_v41 }
  0xf6   :  { %v361_v42 = vpop.eup %360 }
  0xf7   :  { %v127_v45 = vadd.f32 1.0, %v361_v42  ;;  %v130_v48 = vmul.f32 %v128_v43, %v122_v46 }
  0xf9   :  { %v129_v47 = vmul.f32 %v127_v45, %v121_v44 }
  0xfb   :  { %352 = vmatprep.mubr.f32.mxu1 %v129_v47 }
  0xfc   :  { %353 = vmatmul.mubr.f32.vlgmr.msra.gmra.mxu1 %v130_v48 }
 0x1bc   :  { %v354_v50 = vpop.f32.mrf.mxu1 }
 0x1bd   :  { %v226_v51 = vadd.f32 %v354_v50, %v248_v49 }
 0x1be   :  { %v220_v52 = vpop.f32.mrf.mxu1 }
 0x1bf   :  { %230 = vst [vmem:[#allocation2 + $0x8] sm:$0xff] %v226_v51  ;;  %v221_v53 = vadd.f32 %v248_v49, %v220_v52 }
 0x1c1   :  { %229 = vst [vmem:[#allocation2] sm:$0xff] %v221_v53 }
 0x1c2   :  { %373 = shalt.err (!%p370_p4)
}
 0x1c3   :  { %s385_s1 = smov 128   ;;  %s386_s14 = smov 8  }
 0x1c4   :  { %242 = dma.vmem_to_hbm [thread:$0]  %s237_s12, 256, %s533_s5, [#allocation3], %s385_s1, %s385_s1, %s386_s14  }
 0x1c5   :  { %382 = dma.done.wait [#allocation3], 256  }
 0x1c6   :  { %383 = vsyncadd [#allocation3], 4294967040 }
 0x1c7   :  { %246 = vsyncpa [#allocation3], 1 }

// kernel: _mlp_forward_impl.1
= control target key start
LH: loop header
LB: loop body
LE: loop exit
PB: predicated region body
PF: predicated region fallthrough
CT: control target
= control target key end

     0   :  { %s528_s0 = inlined_call_operand.vmem [shape: f32[16,128], index: 0, kind: input, shape index: {}]   ;;  %s529_s1 = inlined_call_operand.vmem [shape: f32[128,128], index: 1, kind: input, shape index: {}]   ;;  %s530_s2 = inlined_call_operand.vmem [shape: f32[1,128], index: 2, kind: input, shape index: {}]   ;;  %s531_s3 = inlined_call_operand.vmem [shape: f32[128,128], index: 3, kind: input, shape index: {}]   ;;  %s532_s4 = inlined_call_operand.vmem [shape: f32[1,128], index: 4, kind: input, shape index: {}]   ;;  %s533_s5 = inlined_call_operand.hbm [shape: f32[16,128], index: 5, kind: output, shape index: {}]  }
   0x1   :  { %v38_v0 = vld [vmem:[%s529_s1 + $0x78] sm:$0xff]  ;;  %v37_v1 = vld [vmem:[%s529_s1 + $0x70] sm:$0xff]  ;;  %v36_v2 = vld [vmem:[%s529_s1 + $0x68] sm:$0xff] }
   0x2   :  { %285 = vmatprep.subr.mxu0 %v38_v0  ;;  %v35_v3 = vld [vmem:[%s529_s1 + $0x60] sm:$0xff]  ;;  %v34_v5 = vld [vmem:[%s529_s1 + $0x58] sm:$0xff]  ;;  %v145_v7 = vld [vmem:[%s531_s3 + $0x70] sm:$0xff] }
   0x3   :  { %286 = vmatpush3.msra.mxu0 %v38_v0  ;;  %v21_v4 = vld [vmem:[%s528_s0] sm:$0xff]  ;;  %v146_v6 = vld [vmem:[%s531_s3 + $0x78] sm:$0xff] }
   0x4   :  { %287 = vmatprep.subr.mxu0 %v37_v1  ;;  %317 = vmatprep.mubr.f32.mxu0 %v21_v4 }
   0x5   :  { %288 = vmatpush3.msra.mxu0 %v37_v1  ;;  %320 = vmatprep.subr.mxu1 %v146_v6 }
   0x6   :  { %289 = vmatprep.subr.mxu0 %v36_v2 }
   0x7   :  { %290 = vmatpush3.msra.mxu0 %v36_v2 }
   0x8   :  { %291 = vmatprep.subr.mxu0 %v35_v3 }
   0x9   :  { %10 = vsyncpa [#allocation3], 0  ;;  %292 = vmatpush3.msra.mxu0 %v35_v3  ;;  %v33_v8 = vld [vmem:[%s529_s1 + $0x50] sm:$0xff]  ;;  %321 = vmatpush3.msra.mxu1 %v146_v6  ;;  %v144_v9 = vld [vmem:[%s531_s3 + $0x68] sm:$0xff]  ;;  %s384_s11 = smov [#allocation2]  }
   0xa   :  { %293 = vmatprep.subr.mxu0 %v34_v5  ;;  %322 = vmatprep.subr.mxu1 %v145_v7  ;;  %v32_v10 = vld [vmem:[%s529_s1 + $0x48] sm:$0xff]  ;;  %v31_v11 = vld [vmem:[%s529_s1 + $0x40] sm:$0xff]  ;;  %v30_v12 = vld [vmem:[%s529_s1 + $0x38] sm:$0xff]  ;;  %s236_s12 = sshll.u32 %s384_s11, 4  ;;  %s237_s12 = int_to_ptr.vmem [resolvable:$true] %s236_s12 }
   0xb   :  { %294 = vmatpush3.msra.mxu0 %v34_v5  ;;  %323 = vmatpush3.msra.mxu1 %v145_v7  ;;  %v29_v13 = vld [vmem:[%s529_s1 + $0x30] sm:$0xff]  ;;  %v28_v14 = vld [vmem:[%s529_s1 + $0x28] sm:$0xff]  ;;  %v27_v15 = vld [vmem:[%s529_s1 + $0x20] sm:$0xff]  ;;  %s362_s13 = scalar_lea.vmem %s237_s12, 256  ;;  %p367_p1 = scmp.lt.s32.totalorder %s237_s12, %s237_s12 }
   0xc   :  { %295 = vmatprep.subr.mxu0 %v33_v8  ;;  %324 = vmatprep.subr.mxu1 %v144_v9  ;;  %v26_v16 = vld [vmem:[%s529_s1 + $0x18] sm:$0xff]  ;;  %v25_v17 = vld [vmem:[%s529_s1 + $0x10] sm:$0xff]  ;;  %v24_v18 = vld [vmem:[%s529_s1 + $0x8] sm:$0xff]  ;;  %p363_p0 = scmp.ne.s32.totalorder %s237_s12, %s362_s13  ;;  %p368_p2 = scmp.lt.s32.totalorder %s362_s13, %s362_s13 }
   0xd   :  { %296 = vmatpush3.msra.mxu0 %v33_v8  ;;  %325 = vmatpush3.msra.mxu1 %v144_v9  ;;  %v23_v19 = vld [vmem:[%s529_s1] sm:$0xff]  ;;  %v22_v20 = vld [vmem:[%s528_s0 + $0x8] sm:$0xff]  ;;  %v142_v22 = vld [vmem:[%s531_s3 + $0x58] sm:$0xff] }
   0xe   :  { %297 = vmatprep.subr.mxu0 %v32_v10  ;;  %v143_v21 = vld [vmem:[%s531_s3 + $0x60] sm:$0xff]  ;;  %v141_v23 = vld [vmem:[%s531_s3 + $0x50] sm:$0xff]  ;;  %v140_v24 = vld [vmem:[%s531_s3 + $0x48] sm:$0xff]  ;;  %p369_p3 = por %p368_p2, %p367_p1 }
   0xf   :  { %298 = vmatpush3.msra.mxu0 %v32_v10  ;;  %326 = vmatprep.subr.mxu1 %v143_v21  ;;  %v139_v25 = vld [vmem:[%s531_s3 + $0x40] sm:$0xff]  ;;  %v138_v26 = vld [vmem:[%s531_s3 + $0x38] sm:$0xff]  ;;  %v137_v27 = vld [vmem:[%s531_s3 + $0x30] sm:$0xff] }
  0x10   :  { %299 = vmatprep.subr.mxu0 %v31_v11  ;;  %327 = vmatpush3.msra.mxu1 %v143_v21  ;;  %v136_v28 = vld [vmem:[%s531_s3 + $0x28] sm:$0xff]  ;;  %v135_v29 = vld [vmem:[%s531_s3 + $0x20] sm:$0xff]  ;;  %v134_v30 = vld [vmem:[%s531_s3 + $0x18] sm:$0xff]  ;;  %p370_p4 = pnand %p369_p3, %p363_p0 }
  0x11   :  { %300 = vmatpush3.msra.mxu0 %v31_v11  ;;  %328 = vmatprep.subr.mxu1 %v142_v22  ;;  %v133_v31 = vld [vmem:[%s531_s3 + $0x10] sm:$0xff]  ;;  %v132_v32 = vld [vmem:[%s531_s3 + $0x8] sm:$0xff]  ;;  %v131_v33 = vld [vmem:[%s531_s3] sm:$0xff] }
  0x12   :  { %301 = vmatprep.subr.mxu0 %v30_v12  ;;  %329 = vmatpush3.msra.mxu1 %v142_v22  ;;  %v247_v34 = vld [vmem:[%s530_s2] ss:$0 sm:$0xff] }
  0x13   :  { %302 = vmatpush3.msra.mxu0 %v30_v12  ;;  %330 = vmatprep.subr.mxu1 %v141_v23  ;;  %v248_v49 = vld [vmem:[%s532_s4] ss:$0 sm:$0xff] }
  0x14   :  { %303 = vmatprep.subr.mxu0 %v29_v13  ;;  %331 = vmatpush3.msra.mxu1 %v141_v23 }
  0x15   :  { %304 = vmatpush3.msra.mxu0 %v29_v13  ;;  %332 = vmatprep.subr.mxu1 %v140_v24 }
  0x16   :  { %305 = vmatprep.subr.mxu0 %v28_v14  ;;  %333 = vmatpush3.msra.mxu1 %v140_v24 }
  0x17   :  { %306 = vmatpush3.msra.mxu0 %v28_v14  ;;  %334 = vmatprep.subr.mxu1 %v139_v25 }
  0x18   :  { %307 = vmatprep.subr.mxu0 %v27_v15  ;;  %335 = vmatpush3.msra.mxu1 %v139_v25 }
  0x19   :  { %308 = vmatpush3.msra.mxu0 %v27_v15  ;;  %336 = vmatprep.subr.mxu1 %v138_v26 }
  0x1a   :  { %309 = vmatprep.subr.mxu0 %v26_v16  ;;  %337 = vmatpush3.msra.mxu1 %v138_v26 }
  0x1b   :  { %310 = vmatpush3.msra.mxu0 %v26_v16  ;;  %338 = vmatprep.subr.mxu1 %v137_v27 }
  0x1c   :  { %311 = vmatprep.subr.mxu0 %v25_v17  ;;  %339 = vmatpush3.msra.mxu1 %v137_v27 }
  0x1d   :  { %312 = vmatpush3.msra.mxu0 %v25_v17  ;;  %340 = vmatprep.subr.mxu1 %v136_v28 }
  0x1e   :  { %313 = vmatprep.subr.mxu0 %v24_v18  ;;  %341 = vmatpush3.msra.mxu1 %v136_v28 }
  0x1f   :  { %314 = vmatpush3.msra.mxu0 %v24_v18  ;;  %342 = vmatprep.subr.mxu1 %v135_v29 }
  0x20   :  { %315 = vmatprep.subr.mxu0 %v23_v19  ;;  %343 = vmatpush3.msra.mxu1 %v135_v29 }
  0x21   :  { %316 = vmatpush3.msra.mxu0 %v23_v19  ;;  %344 = vmatprep.subr.mxu1 %v134_v30 }
  0x22   :  { %318 = vmatmul.mubr.f32.vlgmr.msra.gmra.mxu0 %v22_v20  ;;  %345 = vmatpush3.msra.mxu1 %v134_v30 }
  0x23   :  { %346 = vmatprep.subr.mxu1 %v133_v31 }
  0x24   :  { %347 = vmatpush3.msra.mxu1 %v133_v31 }
  0x25   :  { %348 = vmatprep.subr.mxu1 %v132_v32 }
  0x26   :  { %349 = vmatpush3.msra.mxu1 %v132_v32 }
  0x27   :  { %350 = vmatprep.subr.mxu1 %v131_v33 }
  0x28   :  { %351 = vmatpush3.msra.mxu1 %v131_v33 }
  0xe2   :  { %v319_v35 = vpop.f32.mrf.mxu0 }
  0xe3   :  { %v118_v36 = vadd.f32 %v319_v35, %v247_v34 }
  0xe4   :  { %v112_v37 = vpop.f32.mrf.mxu0 }
  0xe5   :  { %v124_v38 = vmul.f32 0.70710677, %v118_v36  ;;  %v113_v39 = vadd.f32 %v247_v34, %v112_v37  ;;  %v122_v46 = vmul.f32 0.5, %v118_v36 }
  0xe7   :  { %358 = verf.f32 %v124_v38  ;;  %v123_v40 = vmul.f32 0.70710677, %v113_v39  ;;  %v121_v44 = vmul.f32 0.5, %v113_v39 }
  0xe9   :  { %360 = verf.f32 %v123_v40 }
  0xf4   :  { %v359_v41 = vpop.eup %358 }
  0xf5   :  { %v128_v43 = vadd.f32 1.0, %v359_v41 }
  0xf6   :  { %v361_v42 = vpop.eup %360 }
  0xf7   :  { %v127_v45 = vadd.f32 1.0, %v361_v42  ;;  %v130_v48 = vmul.f32 %v128_v43, %v122_v46 }
  0xf9   :  { %v129_v47 = vmul.f32 %v127_v45, %v121_v44 }
  0xfb   :  { %352 = vmatprep.mubr.f32.mxu1 %v129_v47 }
  0xfc   :  { %353 = vmatmul.mubr.f32.vlgmr.msra.gmra.mxu1 %v130_v48 }
 0x1bc   :  { %v354_v50 = vpop.f32.mrf.mxu1 }
 0x1bd   :  { %v226_v51 = vadd.f32 %v354_v50, %v248_v49 }
 0x1be   :  { %v220_v52 = vpop.f32.mrf.mxu1 }
 0x1bf   :  { %230 = vst [vmem:[#allocation2 + $0x8] sm:$0xff] %v226_v51  ;;  %v221_v53 = vadd.f32 %v248_v49, %v220_v52 }
 0x1c1   :  { %229 = vst [vmem:[#allocation2] sm:$0xff] %v221_v53 }
 0x1c2   :  { %373 = shalt.err (!%p370_p4)
}
 0x1c3   :  { %s385_s1 = smov 128   ;;  %s386_s14 = smov 8  }
 0x1c4   :  { %242 = dma.vmem_to_hbm [thread:$0]  %s237_s12, 256, %s533_s5, [#allocation3], %s385_s1, %s385_s1, %s386_s14  }
 0x1c5   :  { %382 = dma.done.wait [#allocation3], 256  }
 0x1c6   :  { %383 = vsyncadd [#allocation3], 4294967040 }
 0x1c7   :  { %246 = vsyncpa [#allocation3], 1 }

</bundles_post_ra>
